<compile_context>
chip_gen: v6e
topology: v6e:2x2x1
jax: 0.10.0
libtpu: 0.0.40
codegen_flags: <defaults>
</compile_context>

<pallas_src>
import functools

import jax
import jax.numpy as jnp
from jax import lax
from jax.experimental import pallas as pl
from jax.experimental.pallas import tpu as pltpu

LEV = 60                        # vertical levels
LEV_PAD = 64                    # each channel occupies a 64-lane slot
C_LEV = 8                       # per-level input variables
C_SFC = 16                      # surface scalar inputs
C_OUT_LEV = 5                   # per-level output channels (mp_constraint path)
C_OUT_SFC = 8                   # surface outputs
HID = 128                       # hidden width of the synthetic "original_model"
D_OUT = C_OUT_LEV * LEV + C_OUT_SFC      # 308
Y_OUT = 6 * LEV + C_OUT_SFC              # 368

STATIC_CH = (1, 4, 5, 6, 7)              # level channels pre-normalized in the XLA pack pass
N_STATIC_LEV = len(STATIC_CH)            # 5
K_STATIC = (N_STATIC_LEV + 1) * LEV_PAD  # 384 : [ch1, ch4, ch5, ch6, ch7, sfc] as bf16
K_RAW = 3 * LEV_PAD                      # 192 : raw [T, qliq, qice] as f32
K_ACT = K_STATIC + K_RAW                 # 576 : fused matmul contraction dim
Y_PAD = 7 * LEV_PAD                      # 448 : lane-dense padded output width


# ----------------------------------------------------------------------------------------------
# Kernel
# ----------------------------------------------------------------------------------------------
def _climsim_kernel(xs_ref, raw_ref, stat_ref, w1_ref, b1_ref, w2_ref, b2_ref, yout_ref):
    # ---- raw fields (f32, needed for dynamic channels and mp_postprocessing) ------------------
    raw = raw_ref[...]                                  # (TB, 192): [T | qliq | qice]
    T_raw = raw[:, 0:LEV_PAD]
    qliq = raw[:, LEV_PAD:2 * LEV_PAD]
    qice = raw[:, 2 * LEV_PAD:3 * LEV_PAD]
    qn_raw = qliq + qice

    d = stat_ref[...]                                   # (8, 64) dynamic-channel stats
    lbd_qn = d[0:1]
    m0, i0 = d[1:2], d[2:3]
    m2, i2 = d[3:4], d[4:5]
    m3, i3 = d[5:6], d[6:7]

    # ---- dynamic channels: qinput_prune + lbd_qn transform + liq_frac + normalize + scrub -----
    lev = lax.broadcasted_iota(jnp.int32, (1, LEV_PAD), 1)
    qn_in = jnp.where(lev < 15, 0.0, qn_raw)            # qinput_prune: levels 0..14 zeroed
    qn_in = 1.0 - jnp.exp(-qn_in * lbd_qn)              # lbd_qn exponential transform
    liq_frac = jnp.clip((T_raw - 253.16) * 0.05, 0.0, 1.0)   # temperature_scaling

    def norm(x, m, i):
        y = (x - m) * i                                 # reciprocal pre-folded on host
        return jnp.where(jnp.abs(y) < jnp.inf, y, 0.0)  # NaN / +-Inf scrub (x_main only)

    dyn = jnp.concatenate([norm(T_raw, m0, i0),         # ch0
                           norm(qn_in, m2, i2),         # ch2
                           norm(liq_frac, m3, i3)],     # ch3
                          axis=-1).astype(jnp.bfloat16)  # (TB, 192)

    # ---- synthetic original_model: one fused K=576 bf16 matmul + dense ------------------------
    act = jnp.concatenate([xs_ref[...], dyn], axis=-1)   # (TB, 576) bf16, static slots first
    h = jnp.dot(act, w1_ref[...], preferred_element_type=jnp.float32) + b1_ref[...]
    h = jnp.tanh(h).astype(jnp.bfloat16)
    out2 = jnp.dot(h, w2_ref[...], preferred_element_type=jnp.float32) + b2_ref[...]  # (TB, 448)
    # out2 slots (yscale already folded in): [c0, c1, c2, 0, c3, c4, sfc], 64 lanes each.

    # ---- mp_postprocessing ---------------------------------------------------------------------
    c0 = out2[:, 0:LEV_PAD]                              # scaled dT tendency
    c2 = out2[:, 2 * LEV_PAD:3 * LEV_PAD]                # scaled dqn tendency
    T_new = T_raw + c0 * 1200.0
    lf_new = jnp.clip((T_new - 253.16) * 0.05, 0.0, 1.0)
    qn_new = qn_raw + c2 * 1200.0
    inv_1200 = 0.0008333333333333334
    dqliq = (lf_new * qn_new - qliq) * inv_1200
    dqice = ((1.0 - lf_new) * qn_new - qice) * inv_1200

    # slots 2 & 3 of the output are replaced by dqliq / dqice; all other pieces are 128-aligned.
    yout = jnp.concatenate([out2[:, 0:2 * LEV_PAD], dqliq, dqice,
                            out2[:, 4 * LEV_PAD:]], axis=-1)            # (TB, 448)
    yout_ref[...] = jnp.where(yout == yout, yout, 0.0)                  # NaN -> 0 (reference)


# ----------------------------------------------------------------------------------------------
# Host-side parameter packing (done once per set of weights)
# ----------------------------------------------------------------------------------------------
def pack_params(lbd_qn, xmean_lev, xdiv_lev, xmean_sca, xdiv_sca,
                yscale_lev, yscale_sca, w_lev, w_sfc, b1, w2, b2):
    f32 = jnp.float32
    pad = LEV_PAD - LEV

    def pv(v):                                           # (LEV,)-ish -> (64,), zero-padded
        return jnp.pad(jnp.asarray(v, f32).reshape(-1), (0, pad))

    zeros64 = jnp.zeros((LEV_PAD,), f32)

    xmean_lev = jnp.asarray(xmean_lev, f32)              # (8, 60)
    inv_xdiv_lev = 1.0 / jnp.asarray(xdiv_lev, f32)      # (8, 60)
    sfc_mean = jnp.asarray(xmean_sca, f32).reshape(-1)   # (16,)
    sfc_inv = 1.0 / jnp.asarray(xdiv_sca, f32).reshape(-1)

    # normalization constants for the XLA pack pass (static channels 1,4,5,6,7)
    static_mean = jnp.stack([xmean_lev[c] for c in STATIC_CH])          # (5, 60)
    static_inv = jnp.stack([inv_xdiv_lev[c] for c in STATIC_CH])        # (5, 60)

    # in-kernel stats for dynamic channels 0 (T), 2 (qn), 3 (liq_frac)
    stat_d = jnp.stack([pv(lbd_qn),
                        pv(xmean_lev[0]), pv(inv_xdiv_lev[0]),
                        pv(xmean_lev[2]), pv(inv_xdiv_lev[2]),
                        pv(xmean_lev[3]), pv(inv_xdiv_lev[3]),
                        zeros64], axis=0)                               # (8, 64)

    # ---- layer-1 weights packed to the activation slot order [static..., sfc, ch0, ch2, ch3] --
    w_lev = jnp.asarray(w_lev, f32)                      # (C_LEV, LEV, HID)
    w_sfc = jnp.asarray(w_sfc, f32)                      # (C_SFC, HID)

    def wl(c):
        return jnp.pad(w_lev[c], ((0, pad), (0, 0)))

    w1_parts = [wl(c) for c in STATIC_CH]
    w1_parts.append(jnp.pad(w_sfc, ((0, LEV_PAD - C_SFC), (0, 0))))
    w1_parts += [wl(0), wl(2), wl(3)]
    w1p = jnp.concatenate(w1_parts, axis=0).astype(jnp.bfloat16)        # (576, HID)
    b1p = jnp.asarray(b1, f32).reshape(1, HID)

    # ---- layer-2 weights, reordered to yout slots with 1/yscale folded in ----------------------
    w2 = jnp.asarray(w2, f32)                            # (HID, 308)
    b2 = jnp.asarray(b2, f32).reshape(-1)
    inv_ys_lev = 1.0 / jnp.asarray(yscale_lev, f32)      # (5, 60)
    inv_ys_sca = 1.0 / jnp.asarray(yscale_sca, f32).reshape(-1)         # (8,)

    def w2_lev(c):
        return jnp.pad(w2[:, c * LEV:(c + 1) * LEV] * inv_ys_lev[c][None, :],
                       ((0, 0), (0, pad)))

    def b2_lev(c):
        return jnp.pad(b2[c * LEV:(c + 1) * LEV] * inv_ys_lev[c], (0, pad))

    zcol = jnp.zeros((HID, LEV_PAD), f32)
    w2_parts = [w2_lev(0), w2_lev(1), w2_lev(2), zcol, w2_lev(3), w2_lev(4),
                jnp.pad(w2[:, C_OUT_LEV * LEV:] * inv_ys_sca[None, :],
                        ((0, 0), (0, LEV_PAD - C_OUT_SFC)))]
    w2p = jnp.concatenate(w2_parts, axis=1).astype(jnp.bfloat16)        # (HID, 448)
    b2_parts = [b2_lev(0), b2_lev(1), b2_lev(2), zeros64, b2_lev(3), b2_lev(4),
                jnp.pad(b2[C_OUT_LEV * LEV:] * inv_ys_sca, (0, LEV_PAD - C_OUT_SFC))]
    b2p = jnp.concatenate(b2_parts).reshape(1, Y_PAD)

    return (static_mean, static_inv, sfc_mean, sfc_inv, stat_d, w1p, b1p, w2p, b2p)


# ----------------------------------------------------------------------------------------------
# Batch-tile heuristic
# ----------------------------------------------------------------------------------------------
def _pick_tb(B: int) -> int:
    """Big tiles amortize the ~0.35us/grid-step overhead on this HBM-bound kernel; >=2 (and
    preferably even) grid steps keep both v7x TensorCores busy; capped near 512 rows so the
    double-buffered tiles stay well inside v5e's scoped VMEM (raised to 32 MiB below)."""
    cdiv = lambda a, b: -(-a // b)
    if B < 256:
        return max(16, cdiv(B, 16) * 16)        # single small tile (16-row bf16 sublane pack)
    n = max(2, cdiv(B, 512))
    if n > 2 and n % 2:
        n += 1                                  # even step count balances v7x's 2 TCs
    return cdiv(cdiv(B, n), 16) * 16


# ----------------------------------------------------------------------------------------------
# Forward
# ----------------------------------------------------------------------------------------------
def _forward_impl(x_main, x_sfc, packed, tb):
    (static_mean, static_inv, sfc_mean, sfc_inv,
     stat_d, w1p, b1p, w2p, b2p) = packed
    B = x_main.shape[0]
    pad = LEV_PAD - LEV
    xm = jnp.asarray(x_main, jnp.float32)                # (B, 60, C_LEV)
    xsf = jnp.asarray(x_sfc, jnp.float32)                # (B, 16)

    # ---- pack pass (XLA-fused): static normalization folded in, emitted as bf16 ---------------
    stat = jnp.stack([xm[:, :, c] for c in STATIC_CH], axis=1)          # (B, 5, 60)
    stat = (stat - static_mean[None]) * static_inv[None]
    stat = stat.at[:, 0, :].set(jnp.clip(stat[:, 0, :], 0.0, 1.2))      # ch1 clamp [0, 1.2]
    stat = jnp.where(jnp.abs(stat) < jnp.inf, stat, 0.0)                # NaN/Inf scrub (x_main)
    stat = jnp.pad(stat, ((0, 0), (0, 0), (0, pad))).reshape(B, N_STATIC_LEV * LEV_PAD)

    sfc = jnp.where(xsf >= 1e10, -1.0, xsf)                             # snowhice_fix
    sfc = (sfc - sfc_mean[None]) * sfc_inv[None]                        # (no scrub, as reference)
    sfc = jnp.pad(sfc, ((0, 0), (0, LEV_PAD - C_SFC)))

    xs_bf = jnp.concatenate([stat, sfc], axis=-1).astype(jnp.bfloat16)  # (B, 384) bf16

    raw = jnp.stack([xm[:, :, 0], xm[:, :, 2], xm[:, :, 3]], axis=1)    # (B, 3, 60) raw T/ql/qi
    raw = jnp.pad(raw, ((0, 0), (0, 0), (0, pad))).reshape(B, K_RAW)    # (B, 192) f32

    n_tiles = -(-B // tb)
    Bp = n_tiles * tb
    if Bp != B:                                          # pad batch so no rows are dropped
        xs_bf = jnp.pad(xs_bf, ((0, Bp - B), (0, 0)))
        raw = jnp.pad(raw, ((0, Bp - B), (0, 0)))

    cost = pl.CostEstimate(
        flops=2 * Bp * (K_ACT * HID + HID * Y_PAD),
        transcendentals=Bp * (LEV_PAD + HID),            # exp (qn) + tanh (hidden)
        bytes_accessed=(Bp * (K_STATIC * 2 + K_RAW * 4 + Y_PAD * 4)
                        + 2 * (K_ACT * HID + HID * Y_PAD)
                        + 4 * (HID + Y_PAD + 8 * LEV_PAD)),
    )

    yp = pl.pallas_call(
        _climsim_kernel,
        grid=(n_tiles,),
        in_specs=[
            pl.BlockSpec((tb, K_STATIC), lambda i: (i, 0)),      # pre-normalized static (bf16)
            pl.BlockSpec((tb, K_RAW), lambda i: (i, 0)),         # raw T / qliq / qice (f32)
            pl.BlockSpec((8, LEV_PAD), lambda i: (0, 0)),        # dynamic-channel stats
            pl.BlockSpec((K_ACT, HID), lambda i: (0, 0)),        # w1 (bf16, packed)
            pl.BlockSpec((1, HID), lambda i: (0, 0)),            # b1
            pl.BlockSpec((HID, Y_PAD), lambda i: (0, 0)),        # w2 (bf16, yscale folded)
            pl.BlockSpec((1, Y_PAD), lambda i: (0, 0)),          # b2 (yscale folded)
        ],
        out_specs=pl.BlockSpec((tb, Y_PAD), lambda i: (i, 0)),
        out_shape=jax.ShapeDtypeStruct((Bp, Y_PAD), jnp.float32),
        compiler_params=pltpu.CompilerParams(
            dimension_semantics=("parallel",),
            vmem_limit_bytes=32 * 1024 * 1024),
        cost_estimate=cost,
    )(xs_bf, raw, stat_d, w1p, b1p, w2p, b2p)

    # strip batch padding and the 64-lane slot padding -> (B, 368) in the module's layout
    # TODO(synk): consumers that can handle the 64-slot padded layout should take `yp` directly
    # and skip this slice/concat pass.
    yp = yp[:B]
    pieces = [yp[:, s * LEV_PAD:s * LEV_PAD + LEV] for s in range(6)]
    pieces.append(yp[:, 6 * LEV_PAD:6 * LEV_PAD + C_OUT_SFC])
    return jnp.concatenate(pieces, axis=-1)


@functools.partial(jax.jit, static_argnames=("tb",))
def _forward_jit(x_main, x_sfc, packed, tb):
    return _forward_impl(x_main, x_sfc, packed, tb)


def new_model_constraint_forward(x_main, x_sfc, packed, tb=None):
    """x_main: (B, 60, C_LEV), x_sfc: (B, C_SFC) -> yout (B, 368) float32."""
    B = x_main.shape[0]
    if tb is None:
        tb = _pick_tb(B)
    return _forward_jit(x_main, x_sfc, packed, tb)


# ----------------------------------------------------------------------------------------------
if __name__ == "__main__":
    key = jax.random.PRNGKey(0)
    ks = jax.random.split(key, 16)
    B = 8

    # ---- deterministic example inputs (physically-plausible ranges) ----
    T = 200.0 + 100.0 * jax.random.uniform(ks[0], (B, LEV))          # temperature [K]
    rh = 1.5 * jax.random.uniform(ks[1], (B, LEV))                   # channel 1
    qc = 1e-4 * jax.random.uniform(ks[2], (B, LEV))                  # liquid water
    qi = 1e-4 * jax.random.uniform(ks[3], (B, LEV))                  # ice water
    other = jax.random.normal(ks[4], (B, LEV, C_LEV - 4))
    x_main = jnp.concatenate(
        [T[..., None], rh[..., None], qc[..., None], qi[..., None], other], axis=-1
    ).astype(jnp.float32)
    x_sfc = jax.random.normal(ks[5], (B, C_SFC)).astype(jnp.float32)
    x_sfc = x_sfc.at[0, 0].set(2e10)                                 # exercise snowhice_fix

    # ---- deterministic parameters (shapes implied by the module) ----
    # TODO(synk): the real lbd_* vectors and original_model (RNN) weights come from files not
    # available here; synthetic stand-ins with the same shapes/contract are used instead.
    lbd_qn = (1.0 + 1000.0 * jax.random.uniform(ks[6], (1, LEV))).astype(jnp.float32)
    xmean_lev = (0.1 * jax.random.normal(ks[7], (C_LEV, LEV))).astype(jnp.float32)
    xdiv_lev = (0.5 + jax.random.uniform(ks[8], (C_LEV, LEV))).astype(jnp.float32)
    xmean_sca = (0.1 * jax.random.normal(ks[9], (1, C_SFC))).astype(jnp.float32)
    xdiv_sca = (0.5 + jax.random.uniform(ks[10], (1, C_SFC))).astype(jnp.float32)
    yscale_lev = (0.5 + jax.random.uniform(ks[11], (C_OUT_LEV, LEV))).astype(jnp.float32)
    yscale_sca = (0.5 + jax.random.uniform(ks[12], (1, C_OUT_SFC))).astype(jnp.float32)
    w_lev = (0.05 * jax.random.normal(ks[13], (C_LEV, LEV, HID))).astype(jnp.float32)
    w_sfc = (0.05 * jax.random.normal(ks[14], (C_SFC, HID))).astype(jnp.float32)
    b1 = jnp.zeros((1, HID), jnp.float32)
    w2 = (0.05 * jax.random.normal(ks[15], (HID, D_OUT))).astype(jnp.float32)
    b2 = jnp.zeros((1, D_OUT), jnp.float32)

    packed = pack_params(lbd_qn, xmean_lev, xdiv_lev, xmean_sca, xdiv_sca,
                         yscale_lev, yscale_sca, w_lev, w_sfc, b1, w2, b2)
    packed = jax.tree_util.tree_map(jax.block_until_ready, packed)

    yout = new_model_constraint_forward(x_main, x_sfc, packed)
    yout = jax.block_until_ready(yout)
    assert yout.shape == (B, Y_OUT) and yout.dtype == jnp.float32
    assert bool(jnp.all(jnp.isfinite(yout)))
    print("KERNEL_OK")
</pallas_src>

<mosaic_0001>
module attributes {stable_mosaic.version = 11 : i64} {
  func.func @_climsim_kernel(%arg0: i32, %arg1: memref<16x384xbf16, #tpu.memory_space<vmem>>, %arg2: memref<16x192xf32, #tpu.memory_space<vmem>>, %arg3: memref<8x64xf32, #tpu.memory_space<vmem>>, %arg4: memref<576x128xbf16, #tpu.memory_space<vmem>>, %arg5: memref<1x128xf32, #tpu.memory_space<vmem>>, %arg6: memref<128x448xbf16, #tpu.memory_space<vmem>>, %arg7: memref<1x448xf32, #tpu.memory_space<vmem>>, %arg8: memref<16x448xf32, #tpu.memory_space<vmem>>) attributes {dimension_semantics = [#tpu.dimension_semantics<parallel>], iteration_bounds = array<i64: 1>, scalar_prefetch = 0 : i64, scratch_operands = 0 : i64, tpu.core_type = #tpu.core_type<tc>, window_params = [{transform_indices = @transform_0, window_bounds = array<i64: 16, 384>}, {transform_indices = @transform_1, window_bounds = array<i64: 16, 192>}, {pipeline_mode = #tpu.pipeline_mode<synchronous>, transform_indices = @transform_2, window_bounds = array<i64: 8, 64>}, {pipeline_mode = #tpu.pipeline_mode<synchronous>, transform_indices = @transform_3, window_bounds = array<i64: 576, 128>}, {pipeline_mode = #tpu.pipeline_mode<synchronous>, transform_indices = @transform_4, window_bounds = array<i64: 1, 128>}, {pipeline_mode = #tpu.pipeline_mode<synchronous>, transform_indices = @transform_5, window_bounds = array<i64: 128, 448>}, {pipeline_mode = #tpu.pipeline_mode<synchronous>, transform_indices = @transform_6, window_bounds = array<i64: 1, 448>}, {transform_indices = @transform_7, window_bounds = array<i64: 16, 448>}]} {
    %c0 = arith.constant 0 : index
    %c0_0 = arith.constant 0 : index
    %0 = vector.load %arg2[%c0, %c0_0] : memref<16x192xf32, #tpu.memory_space<vmem>>, vector<16x192xf32>
    %1 = vector.extract_strided_slice %0 {offsets = [0, 0], sizes = [16, 64], strides = [1, 1]} : vector<16x192xf32> to vector<16x64xf32>
    %2 = vector.extract_strided_slice %0 {offsets = [0, 64], sizes = [16, 64], strides = [1, 1]} : vector<16x192xf32> to vector<16x64xf32>
    %3 = vector.extract_strided_slice %0 {offsets = [0, 128], sizes = [16, 64], strides = [1, 1]} : vector<16x192xf32> to vector<16x64xf32>
    %4 = arith.addf %2, %3 : vector<16x64xf32>
    %c0_1 = arith.constant 0 : index
    %c0_2 = arith.constant 0 : index
    %5 = vector.load %arg3[%c0_1, %c0_2] : memref<8x64xf32, #tpu.memory_space<vmem>>, vector<8x64xf32>
    %6 = vector.extract_strided_slice %5 {offsets = [0, 0], sizes = [1, 64], strides = [1, 1]} : vector<8x64xf32> to vector<1x64xf32>
    %7 = vector.extract_strided_slice %5 {offsets = [1, 0], sizes = [1, 64], strides = [1, 1]} : vector<8x64xf32> to vector<1x64xf32>
    %8 = vector.extract_strided_slice %5 {offsets = [2, 0], sizes = [1, 64], strides = [1, 1]} : vector<8x64xf32> to vector<1x64xf32>
    %9 = vector.extract_strided_slice %5 {offsets = [3, 0], sizes = [1, 64], strides = [1, 1]} : vector<8x64xf32> to vector<1x64xf32>
    %10 = vector.extract_strided_slice %5 {offsets = [4, 0], sizes = [1, 64], strides = [1, 1]} : vector<8x64xf32> to vector<1x64xf32>
    %11 = vector.extract_strided_slice %5 {offsets = [5, 0], sizes = [1, 64], strides = [1, 1]} : vector<8x64xf32> to vector<1x64xf32>
    %12 = vector.extract_strided_slice %5 {offsets = [6, 0], sizes = [1, 64], strides = [1, 1]} : vector<8x64xf32> to vector<1x64xf32>
    %13 = tpu.iota {dimensions = array<i32: 1>} : vector<1x64xi32>
    %c15_i32 = arith.constant 15 : i32
    %14 = vector.broadcast %c15_i32 : i32 to vector<1x64xi32>
    %15 = arith.cmpi slt, %13, %14 : vector<1x64xi32>
    %cst = arith.constant 0.000000e+00 : f32
    %16 = vector.shape_cast %15 : vector<1x64xi1> to vector<1x64xi1>
    %17 = vector.broadcast %16 : vector<1x64xi1> to vector<16x64xi1>
    %18 = vector.broadcast %cst : f32 to vector<16x64xf32>
    %19 = arith.select %17, %18, %4 : vector<16x64xi1>, vector<16x64xf32>
    %cst_3 = arith.constant 0.000000e+00 : f32
    %20 = vector.broadcast %cst_3 : f32 to vector<16x64xf32>
    %21 = arith.subf %20, %19 : vector<16x64xf32>
    %22 = vector.broadcast %6 : vector<1x64xf32> to vector<16x64xf32>
    %23 = arith.mulf %21, %22 : vector<16x64xf32>
    %24 = math.exp %23 : vector<16x64xf32>
    %cst_4 = arith.constant 1.000000e+00 : f32
    %25 = vector.broadcast %cst_4 : f32 to vector<16x64xf32>
    %26 = arith.subf %25, %24 : vector<16x64xf32>
    %cst_5 = arith.constant 2.531600e+02 : f32
    %27 = vector.broadcast %cst_5 : f32 to vector<16x64xf32>
    %28 = arith.subf %1, %27 : vector<16x64xf32>
    %cst_6 = arith.constant 5.000000e-02 : f32
    %29 = vector.broadcast %cst_6 : f32 to vector<16x64xf32>
    %30 = arith.mulf %28, %29 : vector<16x64xf32>
    %cst_7 = arith.constant 0.000000e+00 : f32
    %cst_8 = arith.constant 1.000000e+00 : f32
    %31 = vector.broadcast %cst_7 : f32 to vector<16x64xf32>
    %32 = arith.maximumf %31, %30 : vector<16x64xf32>
    %33 = vector.broadcast %cst_8 : f32 to vector<16x64xf32>
    %34 = arith.minimumf %33, %32 : vector<16x64xf32>
    %35 = vector.broadcast %7 : vector<1x64xf32> to vector<16x64xf32>
    %36 = arith.subf %1, %35 : vector<16x64xf32>
    %37 = vector.broadcast %8 : vector<1x64xf32> to vector<16x64xf32>
    %38 = arith.mulf %36, %37 : vector<16x64xf32>
    %39 = math.absf %38 : vector<16x64xf32>
    %cst_9 = arith.constant 0x7F800000 : f32
    %40 = vector.broadcast %cst_9 : f32 to vector<16x64xf32>
    %41 = arith.cmpf olt, %39, %40 : vector<16x64xf32>
    %cst_10 = arith.constant 0.000000e+00 : f32
    %42 = vector.broadcast %cst_10 : f32 to vector<16x64xf32>
    %43 = arith.select %41, %38, %42 : vector<16x64xi1>, vector<16x64xf32>
    %44 = vector.broadcast %9 : vector<1x64xf32> to vector<16x64xf32>
    %45 = arith.subf %26, %44 : vector<16x64xf32>
    %46 = vector.broadcast %10 : vector<1x64xf32> to vector<16x64xf32>
    %47 = arith.mulf %45, %46 : vector<16x64xf32>
    %48 = math.absf %47 : vector<16x64xf32>
    %cst_11 = arith.constant 0x7F800000 : f32
    %49 = vector.broadcast %cst_11 : f32 to vector<16x64xf32>
    %50 = arith.cmpf olt, %48, %49 : vector<16x64xf32>
    %cst_12 = arith.constant 0.000000e+00 : f32
    %51 = vector.broadcast %cst_12 : f32 to vector<16x64xf32>
    %52 = arith.select %50, %47, %51 : vector<16x64xi1>, vector<16x64xf32>
    %53 = vector.broadcast %11 : vector<1x64xf32> to vector<16x64xf32>
    %54 = arith.subf %34, %53 : vector<16x64xf32>
    %55 = vector.broadcast %12 : vector<1x64xf32> to vector<16x64xf32>
    %56 = arith.mulf %54, %55 : vector<16x64xf32>
    %57 = math.absf %56 : vector<16x64xf32>
    %cst_13 = arith.constant 0x7F800000 : f32
    %58 = vector.broadcast %cst_13 : f32 to vector<16x64xf32>
    %59 = arith.cmpf olt, %57, %58 : vector<16x64xf32>
    %cst_14 = arith.constant 0.000000e+00 : f32
    %60 = vector.broadcast %cst_14 : f32 to vector<16x64xf32>
    %61 = arith.select %59, %56, %60 : vector<16x64xi1>, vector<16x64xf32>
    %62 = tpu.concatenate %43, %52, %61 in 1 : vector<16x64xf32>, vector<16x64xf32>, vector<16x64xf32> -> vector<16x192xf32>
    %63 = arith.truncf %62 : vector<16x192xf32> to vector<16x192xbf16>
    %c0_15 = arith.constant 0 : index
    %c0_16 = arith.constant 0 : index
    %64 = vector.load %arg1[%c0_15, %c0_16] : memref<16x384xbf16, #tpu.memory_space<vmem>>, vector<16x384xbf16>
    %65 = tpu.concatenate %64, %63 in 1 : vector<16x384xbf16>, vector<16x192xbf16> -> vector<16x576xbf16>
    %c0_17 = arith.constant 0 : index
    %c0_18 = arith.constant 0 : index
    %66 = vector.load %arg4[%c0_17, %c0_18] : memref<576x128xbf16, #tpu.memory_space<vmem>>, vector<576x128xbf16>
    %cst_19 = arith.constant dense<0.000000e+00> : vector<16x128xf32>
    %67 = tpu.matmul %65, %66, %cst_19 {dimension_numbers = #tpu.dot_dimension_numbers<[1], [0], [0], [1], [0, 0, 1, 1], [], []>} : vector<16x576xbf16>, vector<576x128xbf16>, vector<16x128xf32> -> vector<16x128xf32>
    %c0_20 = arith.constant 0 : index
    %c0_21 = arith.constant 0 : index
    %68 = vector.load %arg5[%c0_20, %c0_21] : memref<1x128xf32, #tpu.memory_space<vmem>>, vector<1x128xf32>
    %69 = vector.broadcast %68 : vector<1x128xf32> to vector<16x128xf32>
    %70 = arith.addf %67, %69 : vector<16x128xf32>
    %71 = math.tanh %70 : vector<16x128xf32>
    %72 = arith.truncf %71 : vector<16x128xf32> to vector<16x128xbf16>
    %c0_22 = arith.constant 0 : index
    %c0_23 = arith.constant 0 : index
    %73 = vector.load %arg6[%c0_22, %c0_23] : memref<128x448xbf16, #tpu.memory_space<vmem>>, vector<128x448xbf16>
    %cst_24 = arith.constant dense<0.000000e+00> : vector<16x448xf32>
    %74 = tpu.matmul %72, %73, %cst_24 {dimension_numbers = #tpu.dot_dimension_numbers<[1], [0], [0], [1], [0, 0, 1, 1], [], []>} : vector<16x128xbf16>, vector<128x448xbf16>, vector<16x448xf32> -> vector<16x448xf32>
    %c0_25 = arith.constant 0 : index
    %c0_26 = arith.constant 0 : index
    %75 = vector.load %arg7[%c0_25, %c0_26] : memref<1x448xf32, #tpu.memory_space<vmem>>, vector<1x448xf32>
    %76 = vector.broadcast %75 : vector<1x448xf32> to vector<16x448xf32>
    %77 = arith.addf %74, %76 : vector<16x448xf32>
    %78 = vector.extract_strided_slice %77 {offsets = [0, 0], sizes = [16, 64], strides = [1, 1]} : vector<16x448xf32> to vector<16x64xf32>
    %79 = vector.extract_strided_slice %77 {offsets = [0, 128], sizes = [16, 64], strides = [1, 1]} : vector<16x448xf32> to vector<16x64xf32>
    %cst_27 = arith.constant 1.200000e+03 : f32
    %80 = vector.broadcast %cst_27 : f32 to vector<16x64xf32>
    %81 = arith.mulf %78, %80 : vector<16x64xf32>
    %82 = arith.addf %1, %81 : vector<16x64xf32>
    %cst_28 = arith.constant 2.531600e+02 : f32
    %83 = vector.broadcast %cst_28 : f32 to vector<16x64xf32>
    %84 = arith.subf %82, %83 : vector<16x64xf32>
    %cst_29 = arith.constant 5.000000e-02 : f32
    %85 = vector.broadcast %cst_29 : f32 to vector<16x64xf32>
    %86 = arith.mulf %84, %85 : vector<16x64xf32>
    %cst_30 = arith.constant 0.000000e+00 : f32
    %cst_31 = arith.constant 1.000000e+00 : f32
    %87 = vector.broadcast %cst_30 : f32 to vector<16x64xf32>
    %88 = arith.maximumf %87, %86 : vector<16x64xf32>
    %89 = vector.broadcast %cst_31 : f32 to vector<16x64xf32>
    %90 = arith.minimumf %89, %88 : vector<16x64xf32>
    %cst_32 = arith.constant 1.200000e+03 : f32
    %91 = vector.broadcast %cst_32 : f32 to vector<16x64xf32>
    %92 = arith.mulf %79, %91 : vector<16x64xf32>
    %93 = arith.addf %4, %92 : vector<16x64xf32>
    %94 = arith.mulf %90, %93 : vector<16x64xf32>
    %95 = arith.subf %94, %2 : vector<16x64xf32>
    %cst_33 = arith.constant 8.33333353E-4 : f32
    %96 = vector.broadcast %cst_33 : f32 to vector<16x64xf32>
    %97 = arith.mulf %95, %96 : vector<16x64xf32>
    %cst_34 = arith.constant 1.000000e+00 : f32
    %98 = vector.broadcast %cst_34 : f32 to vector<16x64xf32>
    %99 = arith.subf %98, %90 : vector<16x64xf32>
    %100 = arith.mulf %99, %93 : vector<16x64xf32>
    %101 = arith.subf %100, %3 : vector<16x64xf32>
    %cst_35 = arith.constant 8.33333353E-4 : f32
    %102 = vector.broadcast %cst_35 : f32 to vector<16x64xf32>
    %103 = arith.mulf %101, %102 : vector<16x64xf32>
    %104 = vector.extract_strided_slice %77 {offsets = [0, 0], sizes = [16, 128], strides = [1, 1]} : vector<16x448xf32> to vector<16x128xf32>
    %105 = vector.extract_strided_slice %77 {offsets = [0, 256], sizes = [16, 192], strides = [1, 1]} : vector<16x448xf32> to vector<16x192xf32>
    %106 = tpu.concatenate %104, %97, %103, %105 in 1 : vector<16x128xf32>, vector<16x64xf32>, vector<16x64xf32>, vector<16x192xf32> -> vector<16x448xf32>
    %107 = arith.cmpf oeq, %106, %106 : vector<16x448xf32>
    %cst_36 = arith.constant 0.000000e+00 : f32
    %108 = vector.broadcast %cst_36 : f32 to vector<16x448xf32>
    %109 = arith.select %107, %106, %108 : vector<16x448xi1>, vector<16x448xf32>
    %c0_37 = arith.constant 0 : index
    %c0_38 = arith.constant 0 : index
    %110 = vector.load %arg8[%c0_37, %c0_38] : memref<16x448xf32, #tpu.memory_space<vmem>>, vector<16x448xf32>
    tpu.vector_store %arg8[%c0_37, %c0_38], %109 {strides = array<i32>} : memref<16x448xf32, #tpu.memory_space<vmem>>, vector<16x448xf32>,
    return
  }
  func.func @transform_0(%arg0: i32) -> (i32, i32) {
    %c0_i32 = arith.constant 0 : i32
    %c0_i32_0 = arith.constant 0 : i32
    return %arg0, %c0_i32 : i32, i32
  }
  func.func @transform_1(%arg0: i32) -> (i32, i32) {
    %c0_i32 = arith.constant 0 : i32
    %c0_i32_0 = arith.constant 0 : i32
    return %arg0, %c0_i32 : i32, i32
  }
  func.func @transform_2(%arg0: i32) -> (i32, i32) {
    %c0_i32 = arith.constant 0 : i32
    %c0_i32_0 = arith.constant 0 : i32
    %c0_i32_1 = arith.constant 0 : i32
    return %c0_i32, %c0_i32_0 : i32, i32
  }
  func.func @transform_3(%arg0: i32) -> (i32, i32) {
    %c0_i32 = arith.constant 0 : i32
    %c0_i32_0 = arith.constant 0 : i32
    %c0_i32_1 = arith.constant 0 : i32
    return %c0_i32, %c0_i32_0 : i32, i32
  }
  func.func @transform_4(%arg0: i32) -> (i32, i32) {
    %c0_i32 = arith.constant 0 : i32
    %c0_i32_0 = arith.constant 0 : i32
    %c0_i32_1 = arith.constant 0 : i32
    return %c0_i32, %c0_i32_0 : i32, i32
  }
  func.func @transform_5(%arg0: i32) -> (i32, i32) {
    %c0_i32 = arith.constant 0 : i32
    %c0_i32_0 = arith.constant 0 : i32
    %c0_i32_1 = arith.constant 0 : i32
    return %c0_i32, %c0_i32_0 : i32, i32
  }
  func.func @transform_6(%arg0: i32) -> (i32, i32) {
    %c0_i32 = arith.constant 0 : i32
    %c0_i32_0 = arith.constant 0 : i32
    %c0_i32_1 = arith.constant 0 : i32
    return %c0_i32, %c0_i32_0 : i32, i32
  }
  func.func @transform_7(%arg0: i32) -> (i32, i32) {
    %c0_i32 = arith.constant 0 : i32
    %c0_i32_0 = arith.constant 0 : i32
    return %arg0, %c0_i32 : i32, i32
  }
}

</mosaic_0001>

<bundles_post_ra>
// kernel: _forward_jit.1
= control target key start
LH: loop header
LB: loop body
LE: loop exit
PB: predicated region body
PF: predicated region fallthrough
CT: control target
= control target key end

     0   :  { %s1225_s26 = smov 64   ;;  %v1226_v39 = vmov 0.0   ;;  %v42_v43 = vlaneseq  ;;  %vm1227_vm3 = vmmov 0   ;;  %vm141_vm5 = vcmask 523264   ;;  %s1628_s1 = inlined_call_operand.vmem [shape: f32[16,192], index: 1, kind: input, shape index: {}]   ;;  %s1629_s3 = inlined_call_operand.vmem [shape: bf16[576,128], index: 3, kind: input, shape index: {}]   ;;  %s1630_s0 = inlined_call_operand.vmem [shape: bf16[16,384], index: 0, kind: input, shape index: {}]   ;;  %s1631_s2 = inlined_call_operand.vmem [shape: f32[8,64], index: 2, kind: input, shape index: {}]   ;;  %s1632_s5 = inlined_call_operand.vmem [shape: bf16[128,448], index: 5, kind: input, shape index: {}]   ;;  %s1633_s4 = inlined_call_operand.vmem [shape: f32[1,128], index: 4, kind: input, shape index: {}]   ;;  %s1634_s6 = inlined_call_operand.vmem [shape: f32[1,448], index: 6, kind: input, shape index: {}]   ;;  %s1635_s7 = inlined_call_operand.vmem [shape: f32[16,448], index: 7, kind: output, shape index: {}]  }
   0x1   :  { %v1272_v0 = vld [vmem:[%s1628_s1 + $0x8] sm:$0xff]  ;;  %v1279_v1 = vld [vmem:[%s1628_s1 + $0x18] sm:$0xff]  ;;  %v1286_v2 = vld [vmem:[%s1628_s1] sm:$0xff] }
   0x2   :  { %33 = vrot.lane.b32.xlu0 %v1272_v0, %s1225_s26  ;;  %v1294_v5 = vld [vmem:[%s1628_s1 + $0x10] sm:$0xff]  ;;  %v1129_v8 = vld [vmem:[%s1629_s3 + $0x78] sm:$0xff]   ;;  %v1133_v12 = vld [vmem:[%s1629_s3 + $0x68] sm:$0xff]   ;;  %v1408_v44 = vshrl.u32 %v42_v43, 7  ;;  %v43_v45 = vand.u32 127, %v42_v43 }
   0x3   :  { %v1130_v9 = vld [vmem:[%s1629_s3 + $0x38] sm:$0xff]   ;;  %1059 = vmatprep.subr.bf16.mxu0 %v1129_v8  ;;  %v1131_v10 = vld [vmem:[%s1629_s3 + $0x70] sm:$0xff]   ;;  %v1134_v13 = vld [vmem:[%s1629_s3 + $0x28] sm:$0xff]   ;;  %v982_v54 = vadd.f32 -253.16, %v1286_v2 }
   0x4   :  { %1060 = vmatpush3.bf16.msra.mxu0 %v1130_v9  ;;  %v1132_v11 = vld [vmem:[%s1629_s3 + $0x30] sm:$0xff]   ;;  %v1135_v14 = vld [vmem:[%s1629_s3 + $0x60] sm:$0xff]   ;;  %v1138_v15 = vld [vmem:[%s1629_s3 + $0xf8] sm:$0xff]   ;;  %v61_v46 = vsub.s32 0, %v1408_v44  ;;  %vm44_vm0 = vcmp.lt.s32.totalorder %v43_v45, 15 }
   0x5   :  { %1061 = vmatprep.subr.bf16.mxu0 %v1131_v10  ;;  %v1136_v16 = vld [vmem:[%s1629_s3 + $0x20] sm:$0xff]   ;;  %1081 = vmatprep.subr.bf16.mxu1 %v1138_v15  ;;  %v1140_v17 = vld [vmem:[%s1629_s3 + $0xb8] sm:$0xff]   ;;  %v1142_v19 = vld [vmem:[%s1629_s3 + $0xf0] sm:$0xff]   ;;  %v983_v55 = vadd.f32 -253.16, %v1294_v5  ;;  %v117_v10 = vsub.s32 5, %v1408_v44 }
   0x6   :  { %35 = vrot.lane.b32.xlu0 %v1279_v1, %s1225_s26  ;;  %v1137_v18 = vld [vmem:[%s1629_s3 + $0x58] sm:$0xff]   ;;  %1082 = vmatpush3.bf16.msra.mxu1 %v1140_v17  ;;  %v1144_v21 = vld [vmem:[%s1629_s3 + $0xb0] sm:$0xff]   ;;  %v1146_v23 = vld [vmem:[%s1629_s3 + $0xe8] sm:$0xff]   ;;  %v73_v60 = vmul.f32 0.05, %v982_v54 }
   0x7   :  { %v1139_v20 = vld [vmem:[%s1629_s3 + $0x18] sm:$0xff]   ;;  %1083 = vmatprep.subr.bf16.mxu1 %v1142_v19  ;;  %v1141_v22 = vld [vmem:[%s1629_s3 + $0x50] sm:$0xff]   ;;  %v1148_v25 = vld [vmem:[%s1629_s3 + $0xa8] sm:$0xff]   ;;  %v74_v61 = vmul.f32 0.05, %v983_v55 }
   0x8   :  { %1062 = vmatpush3.bf16.msra.mxu0 %v1132_v11  ;;  %v1143_v24 = vld [vmem:[%s1629_s3 + $0x10] sm:$0xff]   ;;  %v1145_v26 = vld [vmem:[%s1629_s3 + $0x48] sm:$0xff]   ;;  %v1150_v27 = vld [vmem:[%s1629_s3 + $0xe0] sm:$0xff]   ;;  %v75_v63 = vmax.f32 %v73_v60, 0.0  ;;  %v105_v11 = vsub.s32 4, %v1408_v44 }
   0x9   :  { %1063 = vmatprep.subr.bf16.mxu0 %v1133_v12  ;;  %v1147_v28 = vld [vmem:[%s1629_s3 + $0x8] sm:$0xff]   ;;  %v1152_v29 = vld [vmem:[%s1629_s3 + $0xa0] sm:$0xff]   ;;  %v1156_v33 = vld [vmem:[%s1629_s3 + $0xd8] sm:$0xff]  }
   0xa   :  { %1084 = vmatpush3.bf16.msra.mxu1 %v1144_v21  ;;  %v1149_v30 = vld [vmem:[%s1629_s3 + $0x40] sm:$0xff]   ;;  %v1157_v34 = vld [vmem:[%s1629_s3 + $0x98] sm:$0xff]   ;;  %v1159_v36 = vld [vmem:[%s1629_s3 + $0xd0] sm:$0xff]   ;;  %v77_v8 = vmin.f32 %v75_v63, 1.0 }
   0xb   :  { %1085 = vmatprep.subr.bf16.mxu1 %v1146_v23  ;;  %v1151_v31 = vld [vmem:[%s1629_s3] sm:$0xff]   ;;  %v1160_v37 = vld [vmem:[%s1629_s3 + $0x90] sm:$0xff]   ;;  %v1158_v38 = vld [vmem:[%s1629_s3 + $0x118] sm:$0xff]  }
   0xc   :  { %1064 = vmatpush3.bf16.msra.mxu0 %v1134_v13  ;;  %v1155_v32 = vld [vmem:[%s1630_s0 + $0x4] ss:$12 sps:$4 sm:$0xff]   ;;  %v1153_v35 = vld [vmem:[%s1630_s0] ss:$12 sps:$4 sm:$0xff]  }
   0xd   :  { %1065 = vmatprep.subr.bf16.mxu0 %v1135_v14  ;;  %496 = vmatprep.mubr.bf16.mxu0 %v1155_v32  ;;  %v1162_v40 = vld [vmem:[%s1629_s3 + $0xc8] sm:$0xff]   ;;  %v1161_v41 = vld [vmem:[%s1629_s3 + $0x110] sm:$0xff]   ;;  %v1414_v47 = vld [vmem:[%s1631_s2] sm:$0xff]  ;;  %v123_v14 = vsub.s32 6, %v1408_v44 }
   0xe   :  { %1086 = vmatpush3.bf16.msra.mxu1 %v1148_v25  ;;  %v1163_v42 = vld [vmem:[%s1629_s3 + $0x88] sm:$0xff]   ;;  %v62_v48 = vrot.slane %v1414_v47, %v61_v46  ;;  %v118_v12 = vrot.slane %v1414_v47, %v117_v10  ;;  %v106_v19 = vrot.slane %v1414_v47, %v105_v11 }
   0xf   :  { %1087 = vmatprep.subr.bf16.mxu1 %v1150_v27  ;;  %v124_v21 = vrot.slane %v1414_v47, %v123_v14  ;;  %v1166_v27 = vld [vmem:[%s1629_s3 + $0x80] sm:$0xff]  }
  0x10   :  { %1066 = vmatpush3.bf16.msra.mxu0 %v1136_v16  ;;  %v119_v16 = vsub.f32 %v77_v8, %v118_v12 }
  0x11   :  { %1067 = vmatprep.subr.bf16.mxu0 %v1137_v18 }
  0x12   :  { %1088 = vmatpush3.bf16.msra.mxu1 %v1152_v29  ;;  %v125_v23 = vmul.f32 %v124_v21, %v119_v16  ;;  %v1180_v16 = vld [vmem:[%s1632_s5 + $0xcc] ss:$16 sps:$4 sm:$0xff]  }
  0x13   :  { %1089 = vmatprep.subr.bf16.mxu1 %v1156_v33 }
  0x14   :  { %1068 = vmatpush3.bf16.msra.mxu0 %v1139_v20  ;;  %v1164_v20 = vld [vmem:[%s1629_s3 + $0x108] sm:$0xff]  }
  0x15   :  { %1069 = vmatprep.subr.bf16.mxu0 %v1141_v22 }
  0x16   :  { %1090 = vmatpush3.bf16.msra.mxu1 %v1157_v34 }
  0x17   :  { %1091 = vmatprep.subr.bf16.mxu1 %v1159_v36 }
  0x18   :  { %1070 = vmatpush3.bf16.msra.mxu0 %v1143_v24 }
  0x19   :  { %1071 = vmatprep.subr.bf16.mxu0 %v1145_v26  ;;  %v1165_v26 = vld [vmem:[%s1629_s3 + $0xc0] sm:$0xff]  }
  0x1a   :  { %1092 = vmatpush3.bf16.msra.mxu1 %v1160_v37 }
  0x1b   :  { %1093 = vmatprep.subr.bf16.mxu1 %v1162_v40 }
  0x1c   :  { %1072 = vmatpush3.bf16.msra.mxu0 %v1147_v28  ;;  %v1167_v28 = vld [vmem:[%s1629_s3 + $0x100] sm:$0xff]  }
  0x1d   :  { %1073 = vmatprep.subr.bf16.mxu0 %v1149_v30 }
  0x1e   :  { %1094 = vmatpush3.bf16.msra.mxu1 %v1163_v42  ;;  %v1172_v42 = vld [vmem:[%s1632_s5 + $0xe8] ss:$16 sps:$4 sm:$0xff]  }
  0x1f   :  { %1095 = vmatprep.subr.bf16.mxu1 %v1165_v26 }
  0x20   :  { %1074 = vmatpush3.bf16.msra.mxu0 %v1151_v31  ;;  %v127_v31 = vand.u32 2147483647, %v125_v23 }
  0x21   :  { %1108 = vmatprep.subr.bf16.mxu0 %v1226_v39 }
  0x22   :  { %1096 = vmatpush3.bf16.msra.mxu1 %v1166_v27  ;;  %vm129_vm1 = vcmp.lt.f32.partialorder %v127_v31, inf  ;;  %v1189_v27 = vld [vmem:[%s1632_s5 + $0x84] ss:$16 sps:$4 sm:$0xff]   ;;  %v1190_v31 = vld [vmem:[%s1632_s5 + $0x88] ss:$16 sps:$4 sm:$0xff]  }
  0x23   :  { %497 = vmatmul.mubr.bf16.vlgmr.msra.gmra.mxu0 %v1153_v35  ;;  %v131_v36 = vsel %vm129_vm1, %v125_v23, 0.0 }
  0x24   :  { %1109 = vmatpush3.bf16.msra.mxu0 %v1158_v38  ;;  %1116 = vmatprep.mubr.msk.bf16.mxu0 %vm1227_vm3, %v1226_v39 }
  0x25   :  { %1110 = vmatprep.subr.bf16.mxu0 %v1226_v39 }
  0x28   :  { %1111 = vmatpush3.bf16.msra.mxu0 %v1161_v41  ;;  %v1171_v41 = vld [vmem:[%s1632_s5 + $0xe4] ss:$16 sps:$4 sm:$0xff]  }
  0x29   :  { %1112 = vmatprep.subr.bf16.mxu0 %v1226_v39  ;;  %804 = vmatprep.subr.bf16.mxu1 %v1171_v41  ;;  %v1207_v41 = vld [vmem:[%s1632_s5 + $0x24] ss:$16 sps:$4 sm:$0xff]  }
  0x2c   :  { %1113 = vmatpush3.bf16.msra.mxu0 %v1164_v20 }
  0x2d   :  { %1114 = vmatprep.subr.bf16.mxu0 %v1226_v39  ;;  %v1174_v39 = vld [vmem:[%s1632_s5 + $0xec] ss:$16 sps:$4 sm:$0xff]  }
  0x30   :  { %1115 = vmatpush3.bf16.msra.mxu0 %v1167_v28  ;;  %v1192_v28 = vld [vmem:[%s1632_s5 + $0x8c] ss:$16 sps:$4 sm:$0xff]  }
  0x31   :  { %847 = vmatprep.subr.bf16.mxu0 %v1174_v39  ;;  %v1205_v39 = vld [vmem:[%s1632_s5 + $0x20] ss:$16 sps:$4 sm:$0xff]  }
  0x74   :  { %v34_v3 = vpop.permute.xlu0 %33 }
  0x75   :  { %v1289_v4 = vadd.f32 %v34_v3, %v1286_v2  ;;  %v76_v3 = vmax.f32 %v74_v61, 0.0 }
  0x77   :  { %49 = vrot.lane.b32.xlu1 %v1289_v4, %s1225_s26  ;;  %v78_v9 = vmin.f32 %v76_v3, 1.0 }
  0x78   :  { %v36_v6 = vpop.permute.xlu0 %35 }
  0x79   :  { %v1299_v7 = vadd.f32 %v36_v6, %v1294_v5  ;;  %v99_v6 = vsub.s32 3, %v1408_v44  ;;  %v120_v17 = vsub.f32 %v78_v9, %v118_v12 }
  0x7b   :  { %51 = vrot.lane.b32.xlu1 %v1299_v7, %s1225_s26  ;;  %v100_v13 = vrot.slane %v1414_v47, %v99_v6  ;;  %v126_v24 = vmul.f32 %v124_v21, %v120_v17  ;;  %v1183_v21 = vld [vmem:[%s1632_s5 + $0xa4] ss:$16 sps:$4 sm:$0xff]  }
  0x7d   :  { %v128_v32 = vand.u32 2147483647, %v126_v24 }
  0x7f   :  { %vm130_vm2 = vcmp.lt.f32.partialorder %v128_v32, inf  ;;  %v1195_v32 = vld [vmem:[%s1632_s5 + $0x64] ss:$16 sps:$4 sm:$0xff]  }
  0x80   :  { %v132_v37 = vsel %vm130_vm2, %v126_v24, 0.0  ;;  %v1181_v24 = vld [vmem:[%s1632_s5 + $0xa0] ss:$16 sps:$4 sm:$0xff]  }
  0x81   :  { %v145_v38 = vpack.c.bf16 %v132_v37, %v131_v36  ;;  %v1201_v36 = vld [vmem:[%s1632_s5 + $0x44] ss:$16 sps:$4 sm:$0xff]   ;;  %v1199_v37 = vld [vmem:[%s1632_s5 + $0x40] ss:$16 sps:$4 sm:$0xff]  }
  0x83   :  { %1117 = vmatmul.mubr.msk.bf16.vlgmr.msra.gmra.mxu0 %vm141_vm5, %v145_v38  ;;  %v1202_v38 = vld [vmem:[%s1632_s5 + $0x48] ss:$16 sps:$4 sm:$0xff]  }
  0x84   :  { %848 = vmatpush1.bf16.msra.mxu0 %v1172_v42  ;;  %v1210_v42 = vld [vmem:[%s1632_s5 + $0x2c] ss:$16 sps:$4 sm:$0xff]  }
  0x85   :  { %849 = vmatprep.subr.bf16.mxu0 %v1180_v16 }
  0xe3   :  { %v1075_v55 = vpop.f32.mrf.mxu0 }
  0xe9   :  { %v50_v49 = vpop.permute.xlu1 %49 }
  0xea   :  { %v55_v50 = vsel %vm44_vm0, 0.0, %v50_v49  ;;  %v81_v49 = vsub.s32 1, %v1408_v44 }
  0xeb   :  { %v57_v51 = vsub.f32 0.0, %v55_v50 }
  0xec   :  { %v82_v50 = vrot.slane %v1414_v47, %v81_v49 }
  0xed   :  { %v63_v52 = vmul.f32 %v62_v48, %v57_v51  ;;  %v52_v53 = vpop.permute.xlu1 %51  ;;  %v87_v51 = vsub.s32 2, %v1408_v44 }
  0xee   :  { %v56_v56 = vsel %vm44_vm0, 0.0, %v52_v53  ;;  %v84_v53 = vsub.f32 %v1294_v5, %v82_v50 }
  0xef   :  { %v65_v57 = vmul.f32 1.442695, %v63_v52  ;;  %v58_v58 = vsub.f32 0.0, %v56_v56  ;;  %v83_v52 = vsub.f32 %v1286_v2, %v82_v50  ;;  %v88_v54 = vrot.slane %v1414_v47, %v87_v51  ;;  %v1076_v56 = vpop.f32.mrf.mxu0  ;;  %v1168_v47 = vld [vmem:[%s1630_s0 + $0x8] ss:$12 sps:$4 sm:$0xff]  }
  0xf0   :  { %v1228_v50 = vmov 0  }
  0xf1   :  { %1217 = vpow2.f32 %v65_v57  ;;  %v64_v59 = vmul.f32 %v62_v48, %v58_v58  ;;  %v1466_v57 = vadd.f32 %v1076_v56, %v1075_v55  ;;  %v89_v58 = vmul.f32 %v88_v54, %v83_v52  ;;  %v1476_v14 = vpop.f32.mrf.mxu0  ;;  %879 = vmatprep.mubr.bf16.mxu0 %v1228_v50  ;;  %v1211_v52 = vld [vmem:[%s1632_s5] ss:$16 sps:$4 sm:$0xff]  }
  0xf3   :  { %v67_v62 = vmul.f32 1.442695, %v64_v59  ;;  %v90_v59 = vmul.f32 %v88_v54, %v84_v53  ;;  %v91_v60 = vand.u32 2147483647, %v89_v58  ;;  %v1484_v17 = vpop.f32.mrf.mxu0  ;;  %v1214_v53 = vld [vmem:[%s1632_s5 + $0x8] ss:$16 sps:$4 sm:$0xff]  }
  0xf4   :  { %v987_v54 = vld [vmem:[%s1633_s4] ss:$0 sm:$0xff] }
  0xf5   :  { %1219 = vpow2.f32 %v67_v62  ;;  %v92_v61 = vand.u32 2147483647, %v90_v59  ;;  %vm93_vm7 = vcmp.lt.f32.partialorder %v91_v60, inf }
  0xf6   :  { %v95_v63 = vsel %vm93_vm7, %v89_v58, 0.0  ;;  %v499_v58 = vadd.f32 %v1466_v57, %v987_v54  ;;  %v622_v57 = vld [vmem:[%s1634_s6] sm:$0xf] }
  0xf7   :  { %vm94_vm8 = vcmp.lt.f32.partialorder %v92_v61, inf  ;;  %v631_v16 = vrot.slane %v622_v57, %v81_v49 }
  0xf8   :  { %v96_v3 = vsel %vm94_vm8, %v90_v59, 0.0  ;;  %v1080_v59 = vadd.f32 %v1484_v17, %v1476_v14  ;;  %v627_v14 = vrot.slane %v622_v57, %v61_v46 }
  0xfe   :  { %v1218_v15 = vpop.eup %1217 }
  0xff   :  { %v69_v18 = vsub.f32 1.0, %v1218_v15  ;;  %v1177_v15 = vld [vmem:[%s1632_s5 + $0xc4] ss:$16 sps:$4 sm:$0xff]  }
 0x101   :  { %v101_v22 = vsub.f32 %v69_v18, %v100_v13  ;;  %v1175_v18 = vld [vmem:[%s1632_s5 + $0xc0] ss:$16 sps:$4 sm:$0xff]  }
 0x102   :  { %v1220_v25 = vpop.eup %1219 }
 0x103   :  { %v70_v29 = vsub.f32 1.0, %v1220_v25  ;;  %v107_v30 = vmul.f32 %v106_v19, %v101_v22  ;;  %v1186_v22 = vld [vmem:[%s1632_s5 + $0xac] ss:$16 sps:$4 sm:$0xff]   ;;  %v1184_v25 = vld [vmem:[%s1632_s5 + $0xa8] ss:$16 sps:$4 sm:$0xff]  }
 0x105   :  { %v102_v33 = vsub.f32 %v70_v29, %v100_v13  ;;  %v109_v34 = vand.u32 2147483647, %v107_v30  ;;  %v1169_v13 = vld [vmem:[%s1632_s5 + $0xe0] ss:$16 sps:$4 sm:$0xff]  }
 0x107   :  { %v108_v35 = vmul.f32 %v106_v19, %v102_v33  ;;  %vm111_vm4 = vcmp.lt.f32.partialorder %v109_v34, inf  ;;  %v1178_v19 = vld [vmem:[%s1632_s5 + $0xc8] ss:$16 sps:$4 sm:$0xff]   ;;  %v1198_v33 = vld [vmem:[%s1632_s5 + $0x6c] ss:$16 sps:$4 sm:$0xff]  }
 0x108   :  { %v113_v43 = vsel %vm111_vm4, %v107_v30, 0.0  ;;  %850 = vmatpush1.bf16.msra.mxu0 %v1178_v19  ;;  %v1187_v30 = vld [vmem:[%s1632_s5 + $0x80] ss:$16 sps:$4 sm:$0xff]   ;;  %v639_v19 = vrot.slane %v622_v57, %v99_v6 }
 0x109   :  { %v110_v40 = vand.u32 2147483647, %v108_v35  ;;  %851 = vmatprep.subr.bf16.mxu0 %v1186_v22  ;;  %v1193_v34 = vld [vmem:[%s1632_s5 + $0x60] ss:$16 sps:$4 sm:$0xff]  }
 0x10b   :  { %vm112_vm6 = vcmp.lt.f32.partialorder %v110_v40, inf  ;;  %v1204_v40 = vld [vmem:[%s1632_s5 + $0x4c] ss:$16 sps:$4 sm:$0xff]  }
 0x10c   :  { %v114_v45 = vsel %vm112_vm6, %v108_v35, 0.0  ;;  %852 = vmatpush1.bf16.msra.mxu0 %v1184_v25  ;;  %v1196_v35 = vld [vmem:[%s1632_s5 + $0x68] ss:$16 sps:$4 sm:$0xff]  }
 0x10d   :  { %v1124_v48 = vpack.i.bf16 %v114_v45, %v113_v43  ;;  %853 = vmatprep.subr.bf16.mxu0 %v1192_v28  ;;  %v1208_v43 = vld [vmem:[%s1632_s5 + $0x28] ss:$16 sps:$4 sm:$0xff]   ;;  %v1213_v45 = vld [vmem:[%s1632_s5 + $0x4] ss:$16 sps:$4 sm:$0xff]  }
 0x10f   :  { %1125 = vrot.lane.b32.xlu0 %v1124_v48, %s1225_s26  ;;  %v1216_v48 = vld [vmem:[%s1632_s5 + $0xc] ss:$16 sps:$4 sm:$0xff]  }
 0x110   :  { %854 = vmatpush1.bf16.msra.mxu0 %v1190_v31 }
 0x111   :  { %855 = vmatprep.subr.bf16.mxu0 %v1198_v33 }
 0x114   :  { %856 = vmatpush1.bf16.msra.mxu0 %v1196_v35 }
 0x115   :  { %857 = vmatprep.subr.bf16.mxu0 %v1204_v40 }
 0x118   :  { %858 = vmatpush1.bf16.msra.mxu0 %v1202_v38 }
 0x119   :  { %859 = vmatprep.subr.bf16.mxu0 %v1210_v42 }
 0x11c   :  { %860 = vmatpush1.bf16.msra.mxu0 %v1208_v43 }
 0x11d   :  { %861 = vmatprep.subr.bf16.mxu0 %v1216_v48 }
 0x120   :  { %862 = vmatpush1.bf16.msra.mxu0 %v1214_v53 }
 0x143   :  { %v1492_v20 = vpop.f32.mrf.mxu0 }
 0x145   :  { %v1118_v23 = vpop.f32.mrf.mxu0 }
 0x147   :  { %v583_v26 = vpop.f32.mrf.mxu0 }
 0x149   :  { %v1119_v29 = vpop.f32.mrf.mxu0 }
 0x181   :  { %v1126_v62 = vpop.permute.xlu0 %1125 }
 0x182   :  { %v1128_v8 = vunpack.i.h.bf16 %v1126_v62  ;;  %v1127_v9 = vunpack.i.l.bf16 %v1126_v62 }
 0x184   :  { %v142_v10 = vsel %vm141_vm5, %v95_v63, %v1127_v9  ;;  %v143_v11 = vsel %vm141_vm5, %v96_v3, %v1128_v8  ;;  %v502_v3 = vadd.f32 %v1080_v59, %v987_v54 }
 0x185   :  { %v144_v12 = vpack.c.bf16 %v143_v11, %v142_v10 }
 0x187   :  { %537 = vmatprep.mubr.bf16.mxu1 %v144_v12 }
 0x188   :  { %538 = vmatmul.mubr.bf16.vlgmr.msra.gmra.mxu1 %v1168_v47 }
 0x189   :  { %805 = vmatpush1.bf16.msra.mxu1 %v1169_v13  ;;  %836 = vmatprep.mubr.bf16.mxu1 %v1228_v50 }
 0x18a   :  { %806 = vmatprep.subr.bf16.mxu1 %v1177_v15  ;;  %v635_v15 = vrot.slane %v622_v57, %v87_v51 }
 0x18d   :  { %807 = vmatpush1.bf16.msra.mxu1 %v1175_v18 }
 0x18e   :  { %808 = vmatprep.subr.bf16.mxu1 %v1183_v21 }
 0x191   :  { %809 = vmatpush1.bf16.msra.mxu1 %v1181_v24 }
 0x192   :  { %810 = vmatprep.subr.bf16.mxu1 %v1189_v27 }
 0x195   :  { %811 = vmatpush1.bf16.msra.mxu1 %v1187_v30 }
 0x196   :  { %812 = vmatprep.subr.bf16.mxu1 %v1195_v32 }
 0x199   :  { %813 = vmatpush1.bf16.msra.mxu1 %v1193_v34 }
 0x19a   :  { %814 = vmatprep.subr.bf16.mxu1 %v1201_v36 }
 0x19d   :  { %815 = vmatpush1.bf16.msra.mxu1 %v1199_v37 }
 0x19e   :  { %816 = vmatprep.subr.bf16.mxu1 %v1207_v41 }
 0x1a1   :  { %817 = vmatpush1.bf16.msra.mxu1 %v1205_v39 }
 0x1a2   :  { %818 = vmatprep.subr.bf16.mxu1 %v1213_v45 }
 0x1a5   :  { %819 = vmatpush1.bf16.msra.mxu1 %v1211_v52 }
 0x248   :  { %v1097_v55 = vpop.f32.mrf.mxu1 }
 0x24a   :  { %v1098_v56 = vpop.f32.mrf.mxu1 }
 0x24b   :  { %v1099_v60 = vadd.f32 %v1098_v56, %v1097_v55 }
 0x24c   :  { %v1100_v61 = vpop.f32.mrf.mxu1 }
 0x24d   :  { %v540_v62 = vadd.f32 %v1099_v60, %v499_v58 }
 0x24e   :  { %v1101_v63 = vpop.f32.mrf.mxu1 }
 0x24f   :  { %v1102_v8 = vadd.f32 %v1101_v63, %v1100_v61  ;;  %v581_v9 = vadd.f32 %v1492_v20, %v540_v62 }
 0x251   :  { %v543_v10 = vadd.f32 %v1102_v8, %v502_v3  ;;  %1221 = vtanh.f32 %v581_v9 }
 0x253   :  { %v584_v11 = vadd.f32 %v583_v26, %v543_v10 }
 0x255   :  { %1223 = vtanh.f32 %v584_v11 }
 0x25e   :  { %v1222_v47 = vpop.eup %1221 }
 0x262   :  { %v1224_v12 = vpop.eup %1223 }
 0x263   :  { %v589_v13 = vpack.c.bf16 %v1224_v12, %v1222_v47 }
 0x265   :  { %837 = vmatmul.mubr.bf16.vlgmr.msra.gmra.mxu1 %v589_v13  ;;  %880 = vmatmul.mubr.bf16.vlgmr.msra.gmra.mxu0 %v589_v13 }
 0x325   :  { %v838_v17 = vpop.f32.mrf.mxu1  ;;  %v881_v18 = vpop.f32.mrf.mxu0 }
 0x326   :  { %v839_v20 = vadd.f32 %v838_v17, %v627_v14  ;;  %v882_v21 = vadd.f32 %v881_v18, %v635_v15 }
 0x327   :  { %v840_v22 = vpop.f32.mrf.mxu1  ;;  %v883_v23 = vpop.f32.mrf.mxu0 }
 0x328   :  { %vm954_vm9 = vcmp.eq.f32.partialorder %v839_v20, %v839_v20  ;;  %vm956_vm10 = vcmp.eq.f32.partialorder %v882_v21, %v882_v21  ;;  %v841_v24 = vadd.f32 %v840_v22, %v631_v16  ;;  %v884_v26 = vadd.f32 %v883_v23, %v639_v19 }
 0x329   :  { %v962_v25 = vsel %vm954_vm9, %v839_v20, 0.0  ;;  %v964_v46 = vsel %vm956_vm10, %v882_v21, 0.0  ;;  %v842_v27 = vpop.f32.mrf.mxu1  ;;  %v885_v51 = vpop.f32.mrf.mxu0  ;;  %v890_v42 = vmul.f32 1200.0, %v839_v20 }
 0x32a   :  { %970 = vst [vmem:[%s1635_s7] sm:$0xff] %v962_v25  ;;  %972 = vst [vmem:[%s1635_s7 + $0x10] sm:$0xff] %v964_v46  ;;  %v902_v44 = vmul.f32 1200.0, %v841_v24  ;;  %v843_v6 = vadd.f32 %v842_v27, %v627_v14  ;;  %v886_v49 = vadd.f32 %v885_v51, %v635_v15  ;;  %vm957_vm11 = vcmp.eq.f32.partialorder %v884_v26, %v884_v26 }
 0x32b   :  { %v844_v28 = vpop.f32.mrf.mxu1  ;;  %v887_v29 = vpop.f32.mrf.mxu0  ;;  %v965_v30 = vsel %vm957_vm11, %v884_v26, 0.0  ;;  %v892_v39 = vadd.f32 %v890_v42, %v1286_v2 }
 0x32c   :  { %vm958_vm12 = vcmp.eq.f32.partialorder %v843_v6, %v843_v6  ;;  %vm960_vm13 = vcmp.eq.f32.partialorder %v886_v49, %v886_v49  ;;  %906 = vrot.lane.b32.xlu1 %v902_v44, %s1225_s26  ;;  %973 = vst.msk [vmem:[%s1635_s7 + $0x18] sm:$0xff] %vm141_vm5, %v965_v30  ;;  %v845_v33 = vadd.f32 %v844_v28, %v631_v16  ;;  %v891_v43 = vmul.f32 1200.0, %v843_v6 }
 0x32d   :  { %v966_v31 = vsel %vm958_vm12, %v843_v6, 0.0  ;;  %v968_v32 = vsel %vm960_vm13, %v886_v49, 0.0  ;;  %v888_v34 = vadd.f32 %v887_v29, %v639_v19  ;;  %v1057_v45 = vadd.f32 -253.16, %v892_v39 }
 0x32e   :  { %974 = vst [vmem:[%s1635_s7 + $0x20] sm:$0xff] %v966_v31  ;;  %976 = vst [vmem:[%s1635_s7 + $0x30] sm:$0xff] %v968_v32  ;;  %v903_v35 = vmul.f32 1200.0, %v845_v33 }
 0x32f   :  { %vm961_vm14 = vcmp.eq.f32.partialorder %v888_v34, %v888_v34  ;;  %v896_v48 = vmul.f32 0.05, %v1057_v45 }
 0x330   :  { %v969_v36 = vsel %vm961_vm14, %v888_v34, 0.0  ;;  %908 = vrot.lane.b32.xlu0 %v903_v35, %s1225_s26 }
 0x331   :  { %977 = vst.msk [vmem:[%s1635_s7 + $0x38] sm:$0xff] %vm141_vm5, %v969_v36  ;;  %v898_v52 = vmax.f32 %v896_v48, 0.0 }
 0x39e   :  { %v907_v37 = vpop.permute.xlu1 %906 }
 0x39f   :  { %v912_v38 = vadd.f32 %v907_v37, %v1289_v4  ;;  %v893_v4 = vadd.f32 %v891_v43, %v1294_v5 }
 0x3a1   :  { %916 = vrot.lane.b32.xlu1 %v912_v38, %s1225_s26  ;;  %v1058_v50 = vadd.f32 -253.16, %v893_v4 }
 0x3a2   :  { %v909_v40 = vpop.permute.xlu0 %908 }
 0x3a3   :  { %v913_v41 = vadd.f32 %v909_v40, %v1299_v7  ;;  %v897_v53 = vmul.f32 0.05, %v1058_v50  ;;  %v900_v7 = vmin.f32 %v898_v52, 1.0 }
 0x3a5   :  { %926 = vrot.lane.b32.xlu1 %v1286_v2, %s1225_s26  ;;  %918 = vrot.lane.b32.xlu0 %v913_v41, %s1225_s26  ;;  %v899_v54 = vmax.f32 %v897_v53, 0.0  ;;  %v936_v55 = vsub.f32 1.0, %v900_v7 }
 0x3a7   :  { %v901_v58 = vmin.f32 %v899_v54, 1.0 }
 0x3a9   :  { %928 = vrot.lane.b32.xlu0 %v1294_v5, %s1225_s26  ;;  %v937_v61 = vsub.f32 1.0, %v901_v58 }
 0x413   :  { %v917_v56 = vpop.permute.xlu1 %916 }
 0x414   :  { %v938_v59 = vmul.f32 %v936_v55, %v917_v56  ;;  %v922_v9 = vmul.f32 %v917_v56, %v900_v7 }
 0x416   :  { %v940_v60 = vsub.f32 %v938_v59, %v1272_v0 }
 0x417   :  { %v919_v62 = vpop.permute.xlu0 %918  ;;  %v927_v8 = vpop.permute.xlu1 %926 }
 0x418   :  { %v942_v63 = vmul.f32 0.00083333335, %v940_v60  ;;  %v939_v2 = vmul.f32 %v937_v61, %v919_v62  ;;  %v932_v10 = vsub.f32 %v922_v9, %v927_v8  ;;  %v923_v47 = vmul.f32 %v919_v62, %v901_v58 }
 0x41a   :  { %946 = vrot.lane.b32.xlu1 %v942_v63, %s1225_s26  ;;  %v941_v5 = vsub.f32 %v939_v2, %v1279_v1  ;;  %v934_v12 = vmul.f32 0.00083333335, %v932_v10 }
 0x41b   :  { %v929_v11 = vpop.permute.xlu0 %928 }
 0x41c   :  { %v943_v3 = vmul.f32 0.00083333335, %v941_v5  ;;  %v933_v13 = vsub.f32 %v923_v47, %v929_v11 }
 0x41e   :  { %948 = vrot.lane.b32.xlu0 %v943_v3, %s1225_s26  ;;  %v935_v15 = vmul.f32 0.00083333335, %v933_v13 }
 0x48c   :  { %v947_v57 = vpop.permute.xlu1 %946 }
 0x48d   :  { %v952_v0 = vsel %vm141_vm5, %v934_v12, %v947_v57 }
 0x48e   :  { %vm955_vm15 = vcmp.eq.f32.partialorder %v952_v0, %v952_v0 }
 0x48f   :  { %v963_v14 = vsel %vm955_vm15, %v952_v0, 0.0 }
 0x490   :  { %971 = vst [vmem:[%s1635_s7 + $0x8] sm:$0xff] %v963_v14  ;;  %v949_v1 = vpop.permute.xlu0 %948 }
 0x491   :  { %v953_v16 = vsel %vm141_vm5, %v935_v15, %v949_v1 }
 0x492   :  { %vm959_vm0 = vcmp.eq.f32.partialorder %v953_v16, %v953_v16 }
 0x493   :  { %v967_v17 = vsel %vm959_vm0, %v953_v16, 0.0 }
 0x494   :  { %975 = vst [vmem:[%s1635_s7 + $0x28] sm:$0xff] %v967_v17 }

</bundles_post_ra>
